<compile_context>
chip_gen: v6e
topology: v6e:2x2x1
jax: 0.10.0
libtpu: 0.0.40
codegen_flags: <defaults>
</compile_context>

<pallas_src>
import functools
import numpy as np

import jax
import jax.numpy as jnp
from jax.experimental import pallas as pl
from jax.experimental.pallas import tpu as pltpu


def _round_up(x, m):
    return ((x + m - 1) // m) * m


_VMEM_LIMIT = 32 * 1024 * 1024  # explicit scoped-VMEM ceiling, safe on v5e/v6e/v7x


# ----------------------------------------------------------------------------
# Pallas kernels
# ----------------------------------------------------------------------------

def _dense_linear_bias_relu_kernel(x_ref, w_ref, bias_ref, o_ref):
    """stride == 1 branch: y = relu(x @ W_folded + bias).  bf16 x bf16 -> f32."""
    y = jnp.dot(x_ref[...], w_ref[...], preferred_element_type=jnp.float32)
    o_ref[...] = jnp.maximum(y + bias_ref[...], 0.0)


def _grouped_linear_maxpool_bias_relu_kernel(ns, x_ref, w_ref, bias_ref, o_ref):
    """stride != 1 branch: relu(bias + max_s(grouped[s] @ W_folded)).

    x_ref: (ns, tm, cin) bf16 (sample-major), w_ref: (cin, coutp) bf16.
    Per-sample (tm, cin) @ (cin, coutp) MXU matmuls with f32 accumulation,
    max-accumulated into a (tm, coutp) f32 value -> no (tm*ns, coutp)
    intermediate.  Bias + ReLU applied once on the pooled tile (bit-exact
    reorder: constant bias, monotone ReLU).
    """
    w = w_ref[...]
    acc = jnp.dot(x_ref[0], w, preferred_element_type=jnp.float32)
    for s in range(1, ns):  # ns is small & static -> unrolled at trace time
        acc = jnp.maximum(
            acc, jnp.dot(x_ref[s], w, preferred_element_type=jnp.float32))
    o_ref[...] = jnp.maximum(acc + bias_ref[...], 0.0)


# ----------------------------------------------------------------------------
# Pallas wrappers
# ----------------------------------------------------------------------------

@functools.partial(jax.jit, static_argnames=("tile_n",))
def dense_linear_bias_relu(x, w, bias, *, tile_n=1024):
    n, cin = x.shape
    coutp = w.shape[1]
    x = x.astype(jnp.bfloat16)                 # bf16 MXU path; f32 acc + epilogue
    tn = min(tile_n, _round_up(n, 16))         # bf16 sublane packing -> multiple of 16
    grid = pl.cdiv(n, tn)                      # ragged last block is fine (row-wise op)
    cost = pl.CostEstimate(
        flops=2 * n * cin * coutp,
        transcendentals=0,
        bytes_accessed=(n * cin + cin * coutp) * 2 + (coutp + n * coutp) * 4,
    )
    return pl.pallas_call(
        _dense_linear_bias_relu_kernel,
        out_shape=jax.ShapeDtypeStruct((n, coutp), jnp.float32),
        grid=(grid,),
        in_specs=[
            pl.BlockSpec((tn, cin), lambda i: (i, 0)),
            pl.BlockSpec((cin, coutp), lambda i: (0, 0)),
            pl.BlockSpec((1, coutp), lambda i: (0, 0)),
        ],
        out_specs=pl.BlockSpec((tn, coutp), lambda i: (i, 0)),
        compiler_params=pltpu.CompilerParams(
            dimension_semantics=("parallel",), vmem_limit_bytes=_VMEM_LIMIT),
        cost_estimate=cost,
    )(x, w, bias)


@functools.partial(jax.jit, static_argnames=("nsample", "tile_m"))
def grouped_linear_maxpool_bias_relu(grouped_sm, w, bias, *, nsample, tile_m=512):
    """grouped_sm: (nsample, m, cin) bf16, sample-major layout."""
    ns, m, cin = grouped_sm.shape
    assert ns == nsample
    coutp = w.shape[1]
    tm = min(tile_m, _round_up(m, 16))
    grid = pl.cdiv(m, tm)
    cost = pl.CostEstimate(
        flops=2 * ns * m * cin * coutp,
        transcendentals=0,
        bytes_accessed=(ns * m * cin + cin * coutp) * 2 + (coutp + m * coutp) * 4,
    )
    return pl.pallas_call(
        functools.partial(_grouped_linear_maxpool_bias_relu_kernel, nsample),
        out_shape=jax.ShapeDtypeStruct((m, coutp), jnp.float32),
        grid=(grid,),
        in_specs=[
            pl.BlockSpec((ns, tm, cin), lambda i: (0, i, 0)),
            pl.BlockSpec((cin, coutp), lambda i: (0, 0)),
            pl.BlockSpec((1, coutp), lambda i: (0, 0)),
        ],
        out_specs=pl.BlockSpec((tm, coutp), lambda i: (i, 0)),
        compiler_params=pltpu.CompilerParams(
            dimension_semantics=("parallel",), vmem_limit_bytes=_VMEM_LIMIT),
        cost_estimate=cost,
    )(grouped_sm, w, bias)


# ----------------------------------------------------------------------------
# Host-side glue: farthest point sampling + kNN grouping (pointops equivalents)
# TODO(synk): FPS / kNN grouping are data-dependent pointops CUDA ops with no
# clean Pallas equivalent here; done in numpy on the host.
# ----------------------------------------------------------------------------

def _fps_segment(p_seg, m):
    n = p_seg.shape[0]
    idx = np.zeros(m, dtype=np.int64)
    dist = np.full(n, np.inf, dtype=np.float64)
    idx[0] = 0
    for i in range(1, m):
        d = np.sum((p_seg - p_seg[idx[i - 1]]) ** 2, axis=1)
        dist = np.minimum(dist, d)
        idx[i] = int(np.argmax(dist))
    return idx


def _knn_group_segment(p_seg, x_seg, new_p, nsample):
    # (m_seg, n_seg) squared distances; argpartition instead of full argsort
    d = np.sum((new_p[:, None, :] - p_seg[None, :, :]) ** 2, axis=-1)
    k = min(nsample, d.shape[1])
    nn_idx = np.argpartition(d, k - 1, axis=1)[:, :k] if k > 1 else \
        np.argsort(d, axis=1)[:, :k]
    if k < nsample:  # degenerate tiny segment: repeat a neighbour to fill
        nn_idx = np.concatenate(
            [nn_idx, np.repeat(nn_idx[:, :1], nsample - k, axis=1)], axis=1)
    grouped_xyz = p_seg[nn_idx] - new_p[:, None, :]                   # (m_seg, ns, 3)
    grouped_feat = x_seg[nn_idx]                                      # (m_seg, ns, c)
    return np.concatenate([grouped_xyz, grouped_feat], axis=-1)       # with_xyz=True


# ----------------------------------------------------------------------------
# Module
# ----------------------------------------------------------------------------

class TransitionDownPallas:
    def __init__(self, in_planes, out_planes, stride=1, nsample=16,
                 key=jax.random.PRNGKey(0), tile_m=512, tile_n=1024):
        self.stride, self.nsample = stride, nsample
        self.in_planes, self.out_planes = in_planes, out_planes
        self.tile_m, self.tile_n = tile_m, tile_n
        cin = 3 + in_planes if stride != 1 else in_planes
        self.cin = cin

        k_w, k_g, k_b, k_rm, k_rv = jax.random.split(key, 5)
        # nn.Linear(cin, out, bias=False): torch weight is (out, cin); store transpose.
        bound = 1.0 / np.sqrt(cin)
        self.w = jax.random.uniform(k_w, (cin, out_planes), jnp.float32, -bound, bound)

        # BatchNorm1d(out_planes) in eval mode (running stats folded into affine).
        # NOTE: a torch module in train() mode would use batch statistics instead.
        eps = 1e-5
        gamma = 1.0 + 0.1 * jax.random.normal(k_g, (out_planes,), jnp.float32)
        beta = 0.1 * jax.random.normal(k_b, (out_planes,), jnp.float32)
        run_mean = 0.05 * jax.random.normal(k_rm, (out_planes,), jnp.float32)
        run_var = jax.random.uniform(k_rv, (out_planes,), jnp.float32, 0.5, 1.5)
        inv_std = gamma / jnp.sqrt(run_var + eps)
        self.scale = inv_std.reshape(1, -1)                        # (1, cout)
        self.bias = (beta - run_mean * inv_std).reshape(1, -1)     # (1, cout)

        # Kernel-side parameters: fold BN scale into W; pad cout to a lane multiple
        # (128) so loads / MXU-N / stores are full-width.  If out_planes is already
        # a multiple of 128 there is no pad and no post-kernel slice.
        coutp = _round_up(out_planes, 128)
        self.coutp = coutp
        w_folded = self.w * self.scale                             # (cin, cout)
        w_pad = jnp.zeros((cin, coutp), jnp.float32).at[:, :out_planes].set(w_folded)
        b_pad = jnp.zeros((1, coutp), jnp.float32).at[:, :out_planes].set(self.bias)
        self.bias_pad = b_pad
        # Both branches run bf16 x bf16 -> f32 on the MXU.
        self.w_pad = w_pad.astype(jnp.bfloat16)

    def _maybe_slice_cols(self, x_out):
        if self.coutp == self.out_planes:
            return x_out                       # lane-dense, no extra copy
        return x_out[:, :self.out_planes]

    def __call__(self, pxo):
        p, x, o = pxo
        if self.stride != 1:
            # -- host-side, data-dependent (mirrors the .item() loop + pointops) --
            p_np = np.asarray(p, dtype=np.float32)
            x_np = np.asarray(x, dtype=np.float32)
            o_np = np.asarray(o, dtype=np.int64)

            n_o, count = [int(o_np[0]) // self.stride], int(o_np[0]) // self.stride
            for i in range(1, o_np.shape[0]):
                count += (int(o_np[i]) - int(o_np[i - 1])) // self.stride
                n_o.append(count)

            grouped_list, new_p_list = [], []
            start, new_start = 0, 0
            for b in range(o_np.shape[0]):
                end = int(o_np[b])
                new_end = n_o[b]
                m_seg = new_end - new_start
                p_seg, x_seg = p_np[start:end], x_np[start:end]
                idx = _fps_segment(p_seg, m_seg)                   # farthest_point_sampling
                new_p_seg = p_seg[idx]
                grouped_list.append(
                    _knn_group_segment(p_seg, x_seg, new_p_seg, self.nsample))
                new_p_list.append(new_p_seg)
                start, new_start = end, new_end

            grouped_np = np.concatenate(grouped_list, axis=0)      # (M, ns, 3+C) f32
            m = grouped_np.shape[0]
            # Sample-major (ns, M, cin) layout so the kernel's per-sample dot reads a
            # contiguous (tm, cin) slab.  bf16 cast on the host halves H2D transfer
            # and kernel HBM reads; accumulation & epilogue stay f32.
            grouped_sm = jnp.asarray(
                np.ascontiguousarray(grouped_np.transpose(1, 0, 2)).astype(jnp.bfloat16))
            new_p = jnp.asarray(np.concatenate(new_p_list, axis=0))   # (M, 3)
            n_o = jnp.asarray(np.array(n_o, dtype=np.int32))

            # -- hot path in Pallas: per-sample matmul -> max -> bias -> ReLU --
            x_out = grouped_linear_maxpool_bias_relu(
                grouped_sm, self.w_pad, self.bias_pad,
                nsample=self.nsample, tile_m=self.tile_m)
            return [new_p, self._maybe_slice_cols(x_out), n_o]
        else:
            x_out = dense_linear_bias_relu(
                x, self.w_pad, self.bias_pad, tile_n=self.tile_n)
            return [p, self._maybe_slice_cols(x_out), o]

    # pure-JAX references for verifying the kernel hot paths (mirror bf16 rounding,
    # f32 accumulation / epilogue)
    def ref_dense(self, x):
        xb = x.astype(jnp.bfloat16).astype(jnp.float32)
        w = self.w_pad.astype(jnp.float32)[:, :self.out_planes]
        b = self.bias_pad[:, :self.out_planes]
        return jnp.maximum(jnp.dot(xb, w) + b, 0.0)

    def ref_grouped(self, grouped):
        # grouped: (M, ns, cin) f32
        g = grouped.astype(jnp.bfloat16).astype(jnp.float32)
        w = self.w_pad.astype(jnp.float32)[:, :self.out_planes]
        b = self.bias_pad[:, :self.out_planes]
        y = jnp.einsum("mnc,co->mno", g, w)            # f32 acc
        y = jnp.max(y, axis=1)                         # maxpool over nsample
        return jnp.maximum(y + b, 0.0)                 # bias + ReLU after max (== before)


# ----------------------------------------------------------------------------

if __name__ == "__main__":
    key = jax.random.PRNGKey(0)
    k_p, k_x, k_mod1, k_mod2 = jax.random.split(key, 4)

    N, C_IN, C_OUT = 64, 16, 32
    p = jax.random.uniform(k_p, (N, 3), jnp.float32)
    x = jax.random.normal(k_x, (N, C_IN), jnp.float32)
    o = jnp.asarray([32, 64], dtype=jnp.int32)   # 2 batch segments of 32 points each

    # ---- stride != 1 branch (FPS + kNN group + fused linear/maxpool/bias/ReLU) ----
    td_down = TransitionDownPallas(C_IN, C_OUT, stride=4, nsample=8, key=k_mod1)
    new_p, new_x, new_o = td_down([p, x, o])
    jax.block_until_ready(new_x)
    assert new_x.shape == (16, C_OUT) and new_p.shape == (16, 3) and new_o.shape == (2,)

    # verify kernel hot path against a pure-JAX reference
    # (rebuild grouped tensor exactly as the wrapper does, point-major for the ref)
    p_np, x_np, o_np = np.asarray(p), np.asarray(x), np.asarray(o)
    grouped_chk, start, new_start = [], 0, 0
    n_o_chk = [8, 16]
    for b in range(2):
        end = int(o_np[b])
        new_end = n_o_chk[b]
        p_seg, x_seg = p_np[start:end], x_np[start:end]
        idx = _fps_segment(p_seg, new_end - new_start)
        grouped_chk.append(_knn_group_segment(p_seg, x_seg, p_seg[idx], 8))
        start, new_start = end, new_end
    grouped_chk = jnp.asarray(np.concatenate(grouped_chk, axis=0))
    ref_down = td_down.ref_grouped(grouped_chk)
    np.testing.assert_allclose(np.asarray(new_x), np.asarray(ref_down),
                               rtol=2e-3, atol=2e-3)

    # ---- stride == 1 branch (fused linear/bias/ReLU, bf16 MXU, f32 epilogue) ----
    td_same = TransitionDownPallas(C_IN, C_OUT, stride=1, nsample=8, key=k_mod2)
    _, same_x, _ = td_same([p, x, o])
    jax.block_until_ready(same_x)
    assert same_x.shape == (N, C_OUT)
    np.testing.assert_allclose(np.asarray(same_x), np.asarray(td_same.ref_dense(x)),
                               rtol=2e-3, atol=2e-3)

    print("KERNEL_OK")
</pallas_src>

<mosaic_0001>
module attributes {stable_mosaic.version = 11 : i64} {
  func.func @_grouped_linear_maxpool_bias_relu_kernel(%arg0: i32, %arg1: memref<8x16x19xbf16, #tpu.memory_space<vmem>>, %arg2: memref<19x128xbf16, #tpu.memory_space<vmem>>, %arg3: memref<1x128xf32, #tpu.memory_space<vmem>>, %arg4: memref<16x128xf32, #tpu.memory_space<vmem>>) attributes {dimension_semantics = [#tpu.dimension_semantics<parallel>], iteration_bounds = array<i64: 1>, scalar_prefetch = 0 : i64, scratch_operands = 0 : i64, tpu.core_type = #tpu.core_type<tc>, window_params = [{transform_indices = @transform_0, window_bounds = array<i64: 8, 16, 19>}, {pipeline_mode = #tpu.pipeline_mode<synchronous>, transform_indices = @transform_1, window_bounds = array<i64: 19, 128>}, {pipeline_mode = #tpu.pipeline_mode<synchronous>, transform_indices = @transform_2, window_bounds = array<i64: 1, 128>}, {transform_indices = @transform_3, window_bounds = array<i64: 16, 128>}]} {
    %c0 = arith.constant 0 : index
    %c0_0 = arith.constant 0 : index
    %0 = vector.load %arg2[%c0, %c0_0] : memref<19x128xbf16, #tpu.memory_space<vmem>>, vector<19x128xbf16>
    %c0_1 = arith.constant 0 : index
    %c0_2 = arith.constant 0 : index
    %c0_3 = arith.constant 0 : index
    %1 = vector.load %arg1[%c0_1, %c0_2, %c0_3] : memref<8x16x19xbf16, #tpu.memory_space<vmem>>, vector<1x16x19xbf16>
    %2 = vector.shape_cast %1 : vector<1x16x19xbf16> to vector<16x19xbf16>
    %cst = arith.constant dense<0.000000e+00> : vector<16x128xf32>
    %3 = tpu.matmul %2, %0, %cst {dimension_numbers = #tpu.dot_dimension_numbers<[1], [0], [0], [1], [0, 0, 1, 1], [], []>} : vector<16x19xbf16>, vector<19x128xbf16>, vector<16x128xf32> -> vector<16x128xf32>
    %c1 = arith.constant 1 : index
    %c0_4 = arith.constant 0 : index
    %c0_5 = arith.constant 0 : index
    %4 = vector.load %arg1[%c1, %c0_4, %c0_5] : memref<8x16x19xbf16, #tpu.memory_space<vmem>>, vector<1x16x19xbf16>
    %5 = vector.shape_cast %4 : vector<1x16x19xbf16> to vector<16x19xbf16>
    %cst_6 = arith.constant dense<0.000000e+00> : vector<16x128xf32>
    %6 = tpu.matmul %5, %0, %cst_6 {dimension_numbers = #tpu.dot_dimension_numbers<[1], [0], [0], [1], [0, 0, 1, 1], [], []>} : vector<16x19xbf16>, vector<19x128xbf16>, vector<16x128xf32> -> vector<16x128xf32>
    %7 = arith.maximumf %3, %6 : vector<16x128xf32>
    %c2 = arith.constant 2 : index
    %c0_7 = arith.constant 0 : index
    %c0_8 = arith.constant 0 : index
    %8 = vector.load %arg1[%c2, %c0_7, %c0_8] : memref<8x16x19xbf16, #tpu.memory_space<vmem>>, vector<1x16x19xbf16>
    %9 = vector.shape_cast %8 : vector<1x16x19xbf16> to vector<16x19xbf16>
    %cst_9 = arith.constant dense<0.000000e+00> : vector<16x128xf32>
    %10 = tpu.matmul %9, %0, %cst_9 {dimension_numbers = #tpu.dot_dimension_numbers<[1], [0], [0], [1], [0, 0, 1, 1], [], []>} : vector<16x19xbf16>, vector<19x128xbf16>, vector<16x128xf32> -> vector<16x128xf32>
    %11 = arith.maximumf %7, %10 : vector<16x128xf32>
    %c3 = arith.constant 3 : index
    %c0_10 = arith.constant 0 : index
    %c0_11 = arith.constant 0 : index
    %12 = vector.load %arg1[%c3, %c0_10, %c0_11] : memref<8x16x19xbf16, #tpu.memory_space<vmem>>, vector<1x16x19xbf16>
    %13 = vector.shape_cast %12 : vector<1x16x19xbf16> to vector<16x19xbf16>
    %cst_12 = arith.constant dense<0.000000e+00> : vector<16x128xf32>
    %14 = tpu.matmul %13, %0, %cst_12 {dimension_numbers = #tpu.dot_dimension_numbers<[1], [0], [0], [1], [0, 0, 1, 1], [], []>} : vector<16x19xbf16>, vector<19x128xbf16>, vector<16x128xf32> -> vector<16x128xf32>
    %15 = arith.maximumf %11, %14 : vector<16x128xf32>
    %c4 = arith.constant 4 : index
    %c0_13 = arith.constant 0 : index
    %c0_14 = arith.constant 0 : index
    %16 = vector.load %arg1[%c4, %c0_13, %c0_14] : memref<8x16x19xbf16, #tpu.memory_space<vmem>>, vector<1x16x19xbf16>
    %17 = vector.shape_cast %16 : vector<1x16x19xbf16> to vector<16x19xbf16>
    %cst_15 = arith.constant dense<0.000000e+00> : vector<16x128xf32>
    %18 = tpu.matmul %17, %0, %cst_15 {dimension_numbers = #tpu.dot_dimension_numbers<[1], [0], [0], [1], [0, 0, 1, 1], [], []>} : vector<16x19xbf16>, vector<19x128xbf16>, vector<16x128xf32> -> vector<16x128xf32>
    %19 = arith.maximumf %15, %18 : vector<16x128xf32>
    %c5 = arith.constant 5 : index
    %c0_16 = arith.constant 0 : index
    %c0_17 = arith.constant 0 : index
    %20 = vector.load %arg1[%c5, %c0_16, %c0_17] : memref<8x16x19xbf16, #tpu.memory_space<vmem>>, vector<1x16x19xbf16>
    %21 = vector.shape_cast %20 : vector<1x16x19xbf16> to vector<16x19xbf16>
    %cst_18 = arith.constant dense<0.000000e+00> : vector<16x128xf32>
    %22 = tpu.matmul %21, %0, %cst_18 {dimension_numbers = #tpu.dot_dimension_numbers<[1], [0], [0], [1], [0, 0, 1, 1], [], []>} : vector<16x19xbf16>, vector<19x128xbf16>, vector<16x128xf32> -> vector<16x128xf32>
    %23 = arith.maximumf %19, %22 : vector<16x128xf32>
    %c6 = arith.constant 6 : index
    %c0_19 = arith.constant 0 : index
    %c0_20 = arith.constant 0 : index
    %24 = vector.load %arg1[%c6, %c0_19, %c0_20] : memref<8x16x19xbf16, #tpu.memory_space<vmem>>, vector<1x16x19xbf16>
    %25 = vector.shape_cast %24 : vector<1x16x19xbf16> to vector<16x19xbf16>
    %cst_21 = arith.constant dense<0.000000e+00> : vector<16x128xf32>
    %26 = tpu.matmul %25, %0, %cst_21 {dimension_numbers = #tpu.dot_dimension_numbers<[1], [0], [0], [1], [0, 0, 1, 1], [], []>} : vector<16x19xbf16>, vector<19x128xbf16>, vector<16x128xf32> -> vector<16x128xf32>
    %27 = arith.maximumf %23, %26 : vector<16x128xf32>
    %c7 = arith.constant 7 : index
    %c0_22 = arith.constant 0 : index
    %c0_23 = arith.constant 0 : index
    %28 = vector.load %arg1[%c7, %c0_22, %c0_23] : memref<8x16x19xbf16, #tpu.memory_space<vmem>>, vector<1x16x19xbf16>
    %29 = vector.shape_cast %28 : vector<1x16x19xbf16> to vector<16x19xbf16>
    %cst_24 = arith.constant dense<0.000000e+00> : vector<16x128xf32>
    %30 = tpu.matmul %29, %0, %cst_24 {dimension_numbers = #tpu.dot_dimension_numbers<[1], [0], [0], [1], [0, 0, 1, 1], [], []>} : vector<16x19xbf16>, vector<19x128xbf16>, vector<16x128xf32> -> vector<16x128xf32>
    %31 = arith.maximumf %27, %30 : vector<16x128xf32>
    %c0_25 = arith.constant 0 : index
    %c0_26 = arith.constant 0 : index
    %32 = vector.load %arg3[%c0_25, %c0_26] : memref<1x128xf32, #tpu.memory_space<vmem>>, vector<1x128xf32>
    %33 = vector.broadcast %32 : vector<1x128xf32> to vector<16x128xf32>
    %34 = arith.addf %31, %33 : vector<16x128xf32>
    %cst_27 = arith.constant 0.000000e+00 : f32
    %35 = vector.broadcast %cst_27 : f32 to vector<16x128xf32>
    %36 = arith.maximumf %34, %35 : vector<16x128xf32>
    %c0_28 = arith.constant 0 : index
    %c0_29 = arith.constant 0 : index
    %37 = vector.load %arg4[%c0_28, %c0_29] : memref<16x128xf32, #tpu.memory_space<vmem>>, vector<16x128xf32>
    tpu.vector_store %arg4[%c0_28, %c0_29], %36 {strides = array<i32>} : memref<16x128xf32, #tpu.memory_space<vmem>>, vector<16x128xf32>,
    return
  }
  func.func @transform_0(%arg0: i32) -> (i32, i32, i32) {
    %c0_i32 = arith.constant 0 : i32
    %c0_i32_0 = arith.constant 0 : i32
    %c0_i32_1 = arith.constant 0 : i32
    return %c0_i32, %arg0, %c0_i32_0 : i32, i32, i32
  }
  func.func @transform_1(%arg0: i32) -> (i32, i32) {
    %c0_i32 = arith.constant 0 : i32
    %c0_i32_0 = arith.constant 0 : i32
    %c0_i32_1 = arith.constant 0 : i32
    return %c0_i32, %c0_i32_0 : i32, i32
  }
  func.func @transform_2(%arg0: i32) -> (i32, i32) {
    %c0_i32 = arith.constant 0 : i32
    %c0_i32_0 = arith.constant 0 : i32
    %c0_i32_1 = arith.constant 0 : i32
    return %c0_i32, %c0_i32_0 : i32, i32
  }
  func.func @transform_3(%arg0: i32) -> (i32, i32) {
    %c0_i32 = arith.constant 0 : i32
    %c0_i32_0 = arith.constant 0 : i32
    return %arg0, %c0_i32 : i32, i32
  }
}

</mosaic_0001>

<bundles_post_ra>
// kernel: grouped_linear_maxpool_bias_relu.1
= control target key start
LH: loop header
LB: loop body
LE: loop exit
PB: predicated region body
PF: predicated region fallthrough
CT: control target
= control target key end

     0   :  { %8 = vsyncpa [#allocation3], 0  ;;  %s775_s0 = inlined_call_operand.hbm [shape: bf16[8,16,19], index: 0, kind: input, shape index: {}]   ;;  %s776_s1 = inlined_call_operand.hbm [shape: bf16[19,128], index: 1, kind: input, shape index: {}]   ;;  %s777_s2 = inlined_call_operand.vmem [shape: f32[1,128], index: 2, kind: input, shape index: {}]   ;;  %s778_s3 = inlined_call_operand.hbm [shape: f32[16,128], index: 3, kind: output, shape index: {}]  }
   0x1   :  { %9 = vsyncpa [#allocation6], 0 }
   0x2   :  { %10 = vsyncpa [#allocation4], 0  ;;  %s717_s12 = smov [#allocation2]  }
   0x3   :  { %s16_s13 = sshll.u32 %s717_s12, 4  ;;  %s17_s13 = int_to_ptr.vmem [resolvable:$true] %s16_s13 }
   0x4   :  { %s659_s14 = scalar_lea.vmem %s17_s13, 1024  ;;  %p664_p1 = scmp.lt.s32.totalorder %s17_s13, %s17_s13 }
   0x5   :  { %p660_p0 = scmp.ne.s32.totalorder %s17_s13, %s659_s14  ;;  %p665_p2 = scmp.lt.s32.totalorder %s659_s14, %s659_s14 }
   0x7   :  { %p666_p3 = por %p665_p2, %p664_p1 }
   0x9   :  { %p667_p4 = pnand %p666_p3, %p660_p0 }
   0xb   :  { %670 = shalt.err (!%p667_p4)
}
   0xc   :  { %s718_s15 = smov 64   ;;  %s719_s16 = smov 4  }
   0xd   :  { %22 = dma.hbm_to_vmem [thread:$0]  %s775_s0, 1024, %s17_s13, [#allocation3], %s718_s15, %s718_s15, %s719_s16  }
   0xe   :  { %s720_s19 = smov [#allocation5]  }
   0xf   :  { %s28_s20 = sshll.u32 %s720_s19, 4  ;;  %s29_s20 = int_to_ptr.vmem [resolvable:$true] %s28_s20 }
  0x10   :  { %s679_s21 = scalar_lea.vmem %s29_s20, 192  ;;  %p684_p6 = scmp.lt.s32.totalorder %s29_s20, %s29_s20 }
  0x11   :  { %p680_p5 = scmp.ne.s32.totalorder %s29_s20, %s679_s21  ;;  %p685_p7 = scmp.lt.s32.totalorder %s679_s21, %s679_s21 }
  0x13   :  { %p686_p8 = por %p685_p7, %p684_p6 }
  0x15   :  { %p687_p9 = pnand %p686_p8, %p680_p5 }
  0x17   :  { %690 = shalt.err (!%p687_p9)
}
  0x18   :  { %34 = dma.hbm_to_vmem [thread:$0]  %s776_s1, 192, %s29_s20, [#allocation6], %s718_s15, %s718_s15, %s719_s16  }
  0x19   :  { %711 = dma.done.wait [#allocation3], 1024  }
  0x1a   :  { %712 = vsyncadd [#allocation3], 4294966272 }
  0x1b   :  { %713 = dma.done.wait [#allocation6], 192  }
  0x1c   :  { %714 = vsyncadd [#allocation6], 4294967104  ;;  %vm67_vm0 = vcmask 1040384   ;;  %v721_v0 = vmov 0.0   ;;  %vm722_vm1 = vmmov 0   ;;  %vm68_vm2 = vcmask 1041408  }
  0x1d   :  { %567 = vmatprep.subr.bf16.mxu0 %v721_v0  ;;  %575 = vmatprep.subr.bf16.mxu1 %v721_v0  ;;  %v723_v1 = vmov 65535   ;;  %v641_v4 = vld [vmem:[#allocation5 + $0x8] ss:$0 sps:$4 sm:$0x33]   ;;  %v642_v6 = vld [vmem:[#allocation5] sm:$0xff]   ;;  %vm63_vm3 = vcmask 154624  }
  0x1e   :  { %571 = vmatprep.mubr.msk.bf16.mxu0 %vm722_vm1, %v721_v0  ;;  %579 = vmatprep.mubr.msk.bf16.mxu1 %vm722_vm1, %v721_v0  ;;  %v69_v2 = vsel %vm67_vm0, 4294967295, %v723_v1  ;;  %v643_v7 = vld [vmem:[#allocation2] sm:$0xff]   ;;  %v644_v8 = vld [vmem:[#allocation2 + $0x8] sm:$0xff]   ;;  %v645_v9 = vld [vmem:[#allocation2 + $0x10] sm:$0xff]   ;;  %s724_s24 = smov [#allocation7]  }
  0x1f   :  { %v70_v3 = vsel %vm68_vm2, %v69_v2, 0  ;;  %v646_v10 = vld [vmem:[#allocation2 + $0x18] sm:$0xff]   ;;  %v647_v11 = vld [vmem:[#allocation2 + $0x20] sm:$0xff]   ;;  %v648_v12 = vld [vmem:[#allocation2 + $0x28] sm:$0xff]   ;;  %s511_s25 = sshll.u32 %s724_s24, 4  ;;  %s512_s25 = int_to_ptr.vmem [resolvable:$true] %s511_s25 }
  0x20   :  { %v72_v5 = vand.u32 %v641_v4, %v70_v3  ;;  %v649_v13 = vld [vmem:[#allocation2 + $0x30] sm:$0xff]   ;;  %v650_v14 = vld [vmem:[#allocation2 + $0x38] sm:$0xff]   ;;  %v542_v51 = vld [vmem:[%s777_s2] ss:$0 sm:$0xff]  ;;  %s691_s2 = scalar_lea.vmem %s512_s25, 256  ;;  %p696_p11 = scmp.lt.s32.totalorder %s512_s25, %s512_s25 }
  0x21   :  { %p692_p10 = scmp.ne.s32.totalorder %s512_s25, %s691_s2  ;;  %p697_p12 = scmp.lt.s32.totalorder %s691_s2, %s691_s2 }
  0x22   :  { %568 = vmatpush3.bf16.msra.mxu0 %v72_v5  ;;  %576 = vmatpush3.bf16.msra.mxu1 %v72_v5 }
  0x23   :  { %569 = vmatprep.subr.bf16.mxu0 %v721_v0  ;;  %577 = vmatprep.subr.bf16.mxu1 %v721_v0  ;;  %p698_p13 = por %p697_p12, %p696_p11 }
  0x25   :  { %p699_p0 = pnand %p698_p13, %p692_p10 }
  0x26   :  { %570 = vmatpush3.bf16.msra.mxu0 %v642_v6  ;;  %578 = vmatpush3.bf16.msra.mxu1 %v642_v6 }
  0x27   :  { %583 = vmatprep.subr.bf16.mxu0 %v721_v0  ;;  %591 = vmatprep.subr.bf16.mxu1 %v721_v0 }
  0x29   :  { %572 = vmatmul.mubr.msk.bf16.vlgmr.msra.gmra.mxu0 %vm63_vm3, %v643_v7  ;;  %580 = vmatmul.mubr.msk.bf16.vlgmr.msra.gmra.mxu1 %vm63_vm3, %v644_v8 }
  0x2a   :  { %584 = vmatpush3.bf16.msra.mxu0 %v72_v5  ;;  %592 = vmatpush3.bf16.msra.mxu1 %v72_v5 }
  0x2b   :  { %585 = vmatprep.subr.bf16.mxu0 %v721_v0  ;;  %593 = vmatprep.subr.bf16.mxu1 %v721_v0 }
  0x2c   :  { %587 = vmatprep.mubr.msk.bf16.mxu0 %vm722_vm1, %v721_v0  ;;  %595 = vmatprep.mubr.msk.bf16.mxu1 %vm722_vm1, %v721_v0 }
  0x2e   :  { %586 = vmatpush3.bf16.msra.mxu0 %v642_v6  ;;  %594 = vmatpush3.bf16.msra.mxu1 %v642_v6 }
  0x2f   :  { %599 = vmatprep.subr.bf16.mxu0 %v721_v0  ;;  %607 = vmatprep.subr.bf16.mxu1 %v721_v0 }
  0x31   :  { %588 = vmatmul.mubr.msk.bf16.vlgmr.msra.gmra.mxu0 %vm63_vm3, %v645_v9  ;;  %596 = vmatmul.mubr.msk.bf16.vlgmr.msra.gmra.mxu1 %vm63_vm3, %v646_v10 }
  0x32   :  { %600 = vmatpush3.bf16.msra.mxu0 %v72_v5  ;;  %608 = vmatpush3.bf16.msra.mxu1 %v72_v5 }
  0x33   :  { %601 = vmatprep.subr.bf16.mxu0 %v721_v0  ;;  %609 = vmatprep.subr.bf16.mxu1 %v721_v0 }
  0x34   :  { %603 = vmatprep.mubr.msk.bf16.mxu0 %vm722_vm1, %v721_v0  ;;  %611 = vmatprep.mubr.msk.bf16.mxu1 %vm722_vm1, %v721_v0 }
  0x36   :  { %602 = vmatpush3.bf16.msra.mxu0 %v642_v6  ;;  %610 = vmatpush3.bf16.msra.mxu1 %v642_v6 }
  0x37   :  { %615 = vmatprep.subr.bf16.mxu0 %v721_v0  ;;  %623 = vmatprep.subr.bf16.mxu1 %v721_v0 }
  0x39   :  { %604 = vmatmul.mubr.msk.bf16.vlgmr.msra.gmra.mxu0 %vm63_vm3, %v647_v11  ;;  %612 = vmatmul.mubr.msk.bf16.vlgmr.msra.gmra.mxu1 %vm63_vm3, %v648_v12 }
  0x3a   :  { %616 = vmatpush3.bf16.msra.mxu0 %v72_v5  ;;  %624 = vmatpush3.bf16.msra.mxu1 %v72_v5 }
  0x3b   :  { %617 = vmatprep.subr.bf16.mxu0 %v721_v0  ;;  %625 = vmatprep.subr.bf16.mxu1 %v721_v0 }
  0x3c   :  { %619 = vmatprep.mubr.msk.bf16.mxu0 %vm722_vm1, %v721_v0  ;;  %627 = vmatprep.mubr.msk.bf16.mxu1 %vm722_vm1, %v721_v0 }
  0x3e   :  { %618 = vmatpush3.bf16.msra.mxu0 %v642_v6  ;;  %626 = vmatpush3.bf16.msra.mxu1 %v642_v6 }
  0x41   :  { %620 = vmatmul.mubr.msk.bf16.vlgmr.msra.gmra.mxu0 %vm63_vm3, %v649_v13  ;;  %628 = vmatmul.mubr.msk.bf16.vlgmr.msra.gmra.mxu1 %vm63_vm3, %v650_v14 }
  0xe9   :  { %v108_v15 = vpop.f32.mrf.mxu0  ;;  %v160_v16 = vpop.f32.mrf.mxu1 }
  0xea   :  { %v167_v27 = vmax.f32 %v108_v15, %v160_v16 }
  0xeb   :  { %v573_v17 = vpop.f32.mrf.mxu0  ;;  %v581_v18 = vpop.f32.mrf.mxu1 }
  0xed   :  { %v111_v19 = vpop.f32.mrf.mxu0  ;;  %v163_v20 = vpop.f32.mrf.mxu1 }
  0xee   :  { %v168_v33 = vmax.f32 %v111_v19, %v163_v20 }
  0xef   :  { %v574_v21 = vpop.f32.mrf.mxu0  ;;  %v582_v22 = vpop.f32.mrf.mxu1 }
  0xf1   :  { %v214_v23 = vpop.f32.mrf.mxu0  ;;  %v268_v24 = vpop.f32.mrf.mxu1 }
  0xf2   :  { %v221_v30 = vmax.f32 %v167_v27, %v214_v23 }
  0xf3   :  { %v589_v25 = vpop.f32.mrf.mxu0  ;;  %v597_v26 = vpop.f32.mrf.mxu1 }
  0xf4   :  { %v275_v36 = vmax.f32 %v221_v30, %v268_v24 }
  0xf5   :  { %v217_v28 = vpop.f32.mrf.mxu0  ;;  %v271_v29 = vpop.f32.mrf.mxu1 }
  0xf6   :  { %v222_v37 = vmax.f32 %v168_v33, %v217_v28 }
  0xf7   :  { %v590_v31 = vpop.f32.mrf.mxu0  ;;  %v598_v32 = vpop.f32.mrf.mxu1 }
  0xf8   :  { %v276_v43 = vmax.f32 %v222_v37, %v271_v29 }
  0xf9   :  { %v322_v34 = vpop.f32.mrf.mxu0  ;;  %v376_v35 = vpop.f32.mrf.mxu1 }
  0xfa   :  { %v329_v40 = vmax.f32 %v275_v36, %v322_v34 }
  0xfb   :  { %v605_v38 = vpop.f32.mrf.mxu0  ;;  %v613_v39 = vpop.f32.mrf.mxu1 }
  0xfc   :  { %v383_v46 = vmax.f32 %v329_v40, %v376_v35 }
  0xfd   :  { %v325_v41 = vpop.f32.mrf.mxu0  ;;  %v379_v42 = vpop.f32.mrf.mxu1 }
  0xfe   :  { %v330_v47 = vmax.f32 %v276_v43, %v325_v41 }
  0xff   :  { %v606_v44 = vpop.f32.mrf.mxu0  ;;  %v614_v45 = vpop.f32.mrf.mxu1 }
 0x100   :  { %v384_v54 = vmax.f32 %v330_v47, %v379_v42 }
 0x101   :  { %v430_v48 = vpop.f32.mrf.mxu0  ;;  %v484_v49 = vpop.f32.mrf.mxu1 }
 0x102   :  { %v437_v50 = vmax.f32 %v383_v46, %v430_v48 }
 0x103   :  { %v621_v52 = vpop.f32.mrf.mxu0  ;;  %v629_v53 = vpop.f32.mrf.mxu1 }
 0x104   :  { %v491_v55 = vmax.f32 %v437_v50, %v484_v49 }
 0x105   :  { %v433_v56 = vpop.f32.mrf.mxu0  ;;  %v487_v57 = vpop.f32.mrf.mxu1 }
 0x106   :  { %v500_v58 = vadd.f32 %v542_v51, %v491_v55  ;;  %v438_v59 = vmax.f32 %v384_v54, %v433_v56 }
 0x107   :  { %v622_v60 = vpop.f32.mrf.mxu0  ;;  %v630_v61 = vpop.f32.mrf.mxu1 }
 0x108   :  { %v502_v62 = vmax.f32 %v500_v58, 0.0  ;;  %v492_v63 = vmax.f32 %v438_v59, %v487_v57 }
 0x10a   :  { %504 = vst [vmem:[#allocation7] sm:$0xff] %v502_v62  ;;  %v501_v0 = vadd.f32 %v542_v51, %v492_v63 }
 0x10c   :  { %v503_v1 = vmax.f32 %v501_v0, 0.0 }
 0x10e   :  { %505 = vst [vmem:[#allocation7 + $0x8] sm:$0xff] %v503_v1 }
 0x10f   :  { %702 = shalt.err (!%p699_p0)
}
 0x110   :  { %s725_s26 = smov 128   ;;  %s726_s27 = smov 8  }
 0x111   :  { %517 = dma.vmem_to_hbm [thread:$0]  %s512_s25, 256, %s778_s3, [#allocation4], %s725_s26, %s725_s26, %s726_s27  }
 0x112   :  { %715 = dma.done.wait [#allocation4], 256  }
 0x113   :  { %716 = vsyncadd [#allocation4], 4294967040 }
 0x114   :  { %521 = vsyncpa [#allocation3], 1 }
 0x115   :  { %522 = vsyncpa [#allocation6], 1 }
 0x116   :  { %523 = vsyncpa [#allocation4], 1 }

</bundles_post_ra>
